<compile_context>
chip_gen: v7x
topology: tpu7x:2x2x1
jax: 0.10.0
libtpu: 0.0.40
codegen_flags: <defaults>
</compile_context>

<pallas_src>
import functools

import numpy as np

import jax
import jax.numpy as jnp
from jax import lax
from jax.experimental import pallas as pl
from jax.experimental.pallas import tpu as pltpu

LANE = 128                    # lane-pad target for every feature dimension (dense vst stores)
_BN_EPS = 1e-5                # nn.BatchNorm1d default eps


def _rpad(n: int) -> int:
    return ((n + LANE - 1) // LANE) * LANE


def _full_spec(a):
    """Whole-array block (small operands: weights, indices, node features)."""
    nd = a.ndim
    return pl.BlockSpec(a.shape, lambda *_: (0,) * nd)


_VMEM_LIMIT_CACHE = None


def _vmem_limit_bytes():
    """Per-generation scoped-VMEM budget: ~3/4 of physical (~96 MiB v5e/v6e, ~48 MiB v7x)."""
    global _VMEM_LIMIT_CACHE
    if _VMEM_LIMIT_CACHE is None:
        try:
            cap = int(pltpu.get_tpu_info().vmem_capacity_bytes)
        except Exception:
            cap = 0
        _VMEM_LIMIT_CACHE = (cap * 3) // 4 if cap else 32 * 1024 * 1024
    return _VMEM_LIMIT_CACHE


# --------------------------------------------------------------------------------------------
# Dynamic-gather capability probe (tiny one-shot kernels; fall back to one-hot matmul gathers
# if Mosaic's take_along_axis lowering is unavailable so the model always compiles)
# --------------------------------------------------------------------------------------------

def _gather_probe_kernel(x_ref, i_ref, o_ref):
    o_ref[...] = jnp.take_along_axis(x_ref[...], i_ref[...], axis=0,
                                     mode="promise_in_bounds")


def _probe_gather(out_rows):
    try:
        x = jnp.arange(8 * LANE, dtype=jnp.float32).reshape(8, LANE)
        rows = (jnp.arange(out_rows, dtype=jnp.int32) * 3) % 8
        idx = jnp.broadcast_to(rows[:, None], (out_rows, LANE))
        out = pl.pallas_call(
            _gather_probe_kernel,
            out_shape=jax.ShapeDtypeStruct((out_rows, LANE), jnp.float32))(x, idx)
        return bool(jnp.allclose(jax.block_until_ready(out), x[rows]))
    except Exception:
        return False


_GATHER_CAPS = None


def _gather_caps():
    global _GATHER_CAPS
    if _GATHER_CAPS is None:
        any_rows = _probe_gather(16)                 # out rows != src rows (unpool-style)
        same_rows = any_rows or _probe_gather(8)     # out rows == src rows (x_j gather)
        _GATHER_CAPS = {"same_rows": same_rows, "any_rows": any_rows}
    return _GATHER_CAPS


# --------------------------------------------------------------------------------------------
# Fused EdgeConv (+ReLU +BatchNorm +pool/unpool/residual) kernel
# --------------------------------------------------------------------------------------------

def _edgeconv_kernel(*refs, n_rest, mode, add_residual, dmax, eps,
                     gather_xj, gather_unpool):
    i = 0
    x_ref = refs[i]; i += 1            # [N, Cp]   packed node features (f32)
    nbr_ref = refs[i]; i += 1          # [N, Dmax] int32  source node of k-th incoming edge
    msk_ref = refs[i]; i += 1          # [N, Dmax] f32    1.0 valid / 0.0 padded slot
    w1i_ref = refs[i]; i += 1          # [Cp, H1]  bf16   layer-1 weight, x_i rows
    w1d_ref = refs[i]; i += 1          # [Cp, H1]  bf16   layer-1 weight, (x_j - x_i) rows
    b1_ref = refs[i]; i += 1
    rest = []
    for _ in range(n_rest):
        rest.append((refs[i], refs[i + 1]))
        i += 2
    gamma_ref = refs[i]; beta_ref = refs[i + 1]; i += 2
    cluster_ref = None
    if mode in ("pool", "unpool"):
        cluster_ref = refs[i]; i += 1
    res_ref = None
    if add_residual:
        res_ref = refs[i]; i += 1
    if mode == "pool":
        o_ref, opool_ref = refs[i], refs[i + 1]
    else:
        o_ref = refs[i]

    f32 = jnp.float32
    x = x_ref[...]
    N, Cp = x.shape
    nbr = nbr_ref[...]
    msk = msk_ref[...]
    x_bf = x.astype(jnp.bfloat16)
    w1d = w1d_ref[...]

    # x_i part of the edge-MLP's first layer depends only on the destination node:
    # computed once per node (hoisted out of the per-neighbour loop).
    xiw = jnp.dot(x_bf, w1i_ref[...], preferred_element_type=f32) + b1_ref[...]

    c_out = gamma_ref.shape[1]
    acc = jnp.zeros((N, c_out), f32)          # relu-before-max => aggregation identity is 0

    # TODO(synk): for graphs with large max in-degree, replace the unrolled slot loop with
    # lax.fori_loop / a node-tiled "parallel" grid axis + two-pass BatchNorm stats so v7x's
    # second TensorCore participates.
    for k in range(dmax):
        idx_col = nbr[:, k:k + 1]                                    # [N, 1] int32
        if gather_xj:
            x_j = jnp.take_along_axis(x, jnp.broadcast_to(idx_col, (N, Cp)),
                                      axis=0, mode="promise_in_bounds")
        else:
            # fallback: exact f32 one-hot row-gather (only [N, N], never [E, N])
            onehot = (lax.broadcasted_iota(jnp.int32, (N, N), 1) == idx_col).astype(f32)
            x_j = jnp.dot(onehot, x, preferred_element_type=f32)
        h = jnp.maximum(
            xiw + jnp.dot((x_j - x).astype(jnp.bfloat16), w1d,
                          preferred_element_type=f32), 0.0)
        for li, (w_ref, b_ref) in enumerate(rest):
            h = jnp.dot(h.astype(jnp.bfloat16), w_ref[...],
                        preferred_element_type=f32) + b_ref[...]
            if li < n_rest - 1:
                h = jnp.maximum(h, 0.0)
        # relu(max_e m) == max(0, max_e relu(m)); padded/empty slots contribute exactly 0
        acc = jnp.maximum(acc, jnp.maximum(h, 0.0) * msk[:, k:k + 1])

    # --- fused torch.relu + BatchNorm1d (training-mode batch statistics) ----------------------
    mean = jnp.mean(acc, axis=0, keepdims=True)
    ctr = acc - mean
    var = jnp.mean(ctr * ctr, axis=0, keepdims=True)
    y = ctr * lax.rsqrt(var + eps) * gamma_ref[...] + beta_ref[...]

    # --- epilogue: write / avg_pool_x / unpool (X[cluster]) / residual add --------------------
    if mode == "pool":
        o_ref[...] = y
        cl = cluster_ref[...]                                        # [1, N] cluster per node
        n_clusters = opool_ref.shape[0]
        onehot = (lax.broadcasted_iota(jnp.int32, (n_clusters, N), 0) == cl)
        counts = jnp.maximum(jnp.sum(onehot.astype(f32), axis=1, keepdims=True), 1.0)
        pooled = jnp.dot(onehot.astype(jnp.bfloat16), y.astype(jnp.bfloat16),
                         preferred_element_type=f32)
        opool_ref[...] = pooled / counts
    elif mode == "unpool":
        cl = cluster_ref[...]                                        # [Nf, 1] cluster per fine node
        nf = o_ref.shape[0]
        if gather_unpool:
            o_ref[...] = jnp.take_along_axis(y, jnp.broadcast_to(cl, (nf, y.shape[1])),
                                             axis=0, mode="promise_in_bounds")
        else:
            onehot = (lax.broadcasted_iota(jnp.int32, (nf, N), 1) == cl).astype(f32)
            o_ref[...] = jnp.dot(onehot, y, preferred_element_type=f32)
    else:
        out = y
        if add_residual:
            out = out + res_ref[...]
        o_ref[...] = out


def pallas_edgeconv(x, graph, conv_p, bn_p, *, mode="plain", cluster=None,
                    n_out_rows=None, residual=None):
    """Fused EdgeConv(aggr='max') + ReLU + BatchNorm (+ avg_pool_x / X[cluster] / residual)."""
    N = x.shape[0]
    n_rest = len(conv_p['rest'])
    c_out = bn_p[0].shape[1]
    caps = _gather_caps()

    inputs = [x, graph['nbr'], graph['mask'],
              conv_p['w1_i'], conv_p['w1_d'], conv_p['b1']]
    for w, b in conv_p['rest']:
        inputs += [w, b]
    inputs += [bn_p[0], bn_p[1]]
    if mode in ("pool", "unpool"):
        inputs.append(cluster)
    if residual is not None:
        inputs.append(residual)
    in_specs = [_full_spec(a) for a in inputs]

    if mode == "pool":
        out_shape = (jax.ShapeDtypeStruct((N, c_out), jnp.float32),
                     jax.ShapeDtypeStruct((n_out_rows, c_out), jnp.float32))
        out_specs = (pl.BlockSpec((N, c_out), lambda *_: (0, 0)),
                     pl.BlockSpec((n_out_rows, c_out), lambda *_: (0, 0)))
    elif mode == "unpool":
        out_shape = jax.ShapeDtypeStruct((n_out_rows, c_out), jnp.float32)
        out_specs = pl.BlockSpec((n_out_rows, c_out), lambda *_: (0, 0))
    else:
        out_shape = jax.ShapeDtypeStruct((N, c_out), jnp.float32)
        out_specs = pl.BlockSpec((N, c_out), lambda *_: (0, 0))

    kernel = functools.partial(
        _edgeconv_kernel, n_rest=n_rest, mode=mode,
        add_residual=residual is not None, dmax=graph['dmax'], eps=_BN_EPS,
        gather_xj=caps['same_rows'], gather_unpool=caps['any_rows'])

    return pl.pallas_call(
        kernel,
        out_shape=out_shape,
        grid=(1,),            # BatchNorm batch-stats need the whole node set in one invocation
        in_specs=in_specs,
        out_specs=out_specs,
        compiler_params=pltpu.CompilerParams(
            dimension_semantics=("arbitrary",),
            vmem_limit_bytes=_vmem_limit_bytes()),
    )(*inputs)


# --------------------------------------------------------------------------------------------
# Fused Linear-chain kernel (enc, dec, mlp_out + residual), row-tiled / parallel grid
# --------------------------------------------------------------------------------------------

def _mlp_kernel(*refs, nlayers, add_input_residual):
    i = 0
    x_ref = refs[i]; i += 1
    layers = []
    for _ in range(nlayers):
        layers.append((refs[i], refs[i + 1]))
        i += 2
    o_ref = refs[i]

    x = x_ref[...]
    h = x
    for li, (w_ref, b_ref) in enumerate(layers):
        w = w_ref[...]
        h = jnp.dot(h.astype(w.dtype), w, preferred_element_type=jnp.float32) + b_ref[...]
        if li < nlayers - 1:
            h = jnp.maximum(h, 0.0)          # ReLU between Linear layers (get_mlp)
    if add_input_residual:
        h = h + x                            # fused "X = X + mlp_out(X)" residual
    o_ref[...] = h


def _pick_row_tile(n):
    # Feed the MXU >= 128 rows per grid step (tn=8 starved the 128/256-row systolic array and
    # paid the ~0.35us grid-step overhead every 8 rows).
    for t in (512, 256, 128):
        if n % t == 0:
            return t
    return n


def pallas_mlp(x, layers, *, add_input_residual=False):
    N, c_in = x.shape
    c_out = layers[-1][1].shape[1]
    tn = _pick_row_tile(N)

    inputs = [x]
    in_specs = [pl.BlockSpec((tn, c_in), lambda i: (i, 0))]
    for w, b in layers:
        inputs += [w, b]
        in_specs += [_full_spec(w), _full_spec(b)]

    kernel = functools.partial(_mlp_kernel, nlayers=len(layers),
                               add_input_residual=add_input_residual)
    return pl.pallas_call(
        kernel,
        out_shape=jax.ShapeDtypeStruct((N, c_out), jnp.float32),
        grid=(N // tn,),
        in_specs=in_specs,
        out_specs=pl.BlockSpec((tn, c_out), lambda i: (i, 0)),
        compiler_params=pltpu.CompilerParams(
            dimension_semantics=("parallel",),   # row tiles are independent (v7x dual-TC)
            vmem_limit_bytes=_vmem_limit_bytes()),
    )(*inputs)


# --------------------------------------------------------------------------------------------
# Parameter init (padded once, bf16 weights / f32 biases & BN params)
# --------------------------------------------------------------------------------------------

def _init_linear(key, nin, nout, scale=0.1):
    kw, kb = jax.random.split(key)
    w = scale * jax.random.normal(kw, (nin, nout), jnp.float32)
    b = scale * jax.random.normal(kb, (nout,), jnp.float32)
    return w, b


def _pad_weight(w, rpadded, cpadded):
    r, c = w.shape
    return jnp.pad(w, ((0, rpadded - r), (0, cpadded - c))).astype(jnp.bfloat16)


def _pad_bias(b, cpadded):
    return jnp.pad(b, (0, cpadded - b.shape[0])).reshape(1, cpadded).astype(jnp.float32)


def init_mlp_params(key, dims, in_pad=None):
    keys = jax.random.split(key, len(dims) - 1)
    layers = []
    prev = dims[0] if in_pad is None else in_pad
    for i in range(len(dims) - 1):
        w, b = _init_linear(keys[i], dims[i], dims[i + 1])
        outp = _rpad(dims[i + 1])
        layers.append((_pad_weight(w, prev, outp), _pad_bias(b, outp)))
        prev = outp
    return layers


def init_edgeconv_params(key, nfeat, C, conv_dims, c_out, combine="split"):
    """EdgeConv nn = get_mlp([2*nfeat*C, *conv_dims, c_out]).  Layer-1 weight is split into the
    x_i block and the (x_j - x_i) block so cat([x_i, x_j - x_i]) is never materialised.
    combine='presum' folds a duplicated input feature cat([x, x]) by summing the per-copy row
    blocks; combine='split' with nfeat=2 matches the lane-dense packed feature layout."""
    dims = [2 * nfeat * C, *conv_dims, c_out]
    keys = jax.random.split(key, len(dims) - 1)
    w1, b1 = _init_linear(keys[0], dims[0], dims[1])
    h1_pad = _rpad(dims[1])
    half = nfeat * C
    wi, wd = w1[:half], w1[half:]
    if combine == "presum":
        wi = wi[:C] + wi[C:]
        wd = wd[:C] + wd[C:]
    k_pad = _rpad(wi.shape[0])
    params = {'w1_i': _pad_weight(wi, k_pad, h1_pad),
              'w1_d': _pad_weight(wd, k_pad, h1_pad),
              'b1': _pad_bias(b1, h1_pad),
              'rest': []}
    prev = h1_pad
    for li in range(1, len(dims) - 1):
        w, b = _init_linear(keys[li], dims[li], dims[li + 1])
        outp = _rpad(dims[li + 1])
        params['rest'].append((_pad_weight(w, prev, outp), _pad_bias(b, outp)))
        prev = outp
    return params


def init_bn_params(c, c_pad):
    gamma = jnp.zeros((1, c_pad), jnp.float32).at[0, :c].set(1.0)
    beta = jnp.zeros((1, c_pad), jnp.float32)
    return gamma, beta


def init_params(key, n_in, n_out, C, conv_dims, mlp_dims, num_layers):
    # TODO(synk): nn.BatchNorm1d running_mean/var buffer updates (training side effect) are not
    # reproduced; normalization itself uses exact batch statistics (train-mode behaviour).
    c_pad = _rpad(C)
    keys = jax.random.split(key, 2 + num_layers)
    params = {
        'enc': init_mlp_params(keys[0], [n_in, C], in_pad=n_in),   # raw input cols unpadded
        'dec': init_mlp_params(keys[1], [C, n_out], in_pad=c_pad),
        'layers': [],
    }
    for li in range(num_layers):
        lk = jax.random.split(keys[2 + li], 5)
        params['layers'].append({
            'Lconv': [init_edgeconv_params(lk[0], 1, C, conv_dims, C),
                      init_edgeconv_params(lk[1], 1, C, conv_dims, C)],
            # Rconv[0] consumes cat([x0, xu]) (distinct feats -> lane-dense packed input);
            # Rconv[1] consumes cat([x1, x1]) (duplicated feat -> pre-summed layer-1 weight).
            'Rconv': [init_edgeconv_params(lk[2], 2, C, conv_dims, C, combine="split"),
                      init_edgeconv_params(lk[3], 2, C, conv_dims, C, combine="presum")],
            'Lnorm': [init_bn_params(C, c_pad), init_bn_params(C, c_pad)],
            'Rnorm': [init_bn_params(C, c_pad), init_bn_params(C, c_pad)],
            'mlp_out': init_mlp_params(lk[4], [C, *mlp_dims, C], in_pad=c_pad),
        })
    return params


# --------------------------------------------------------------------------------------------
# Graph preprocessing + model forward (plain-JAX glue is index prep / lane-dense packing only)
# --------------------------------------------------------------------------------------------

def prepare_graph(edges, clusters, nodes_per_level):
    """Host-side index preprocessing: padded per-destination neighbour lists (the sorted-by-dst
    layout) so the kernel's gather + segment-max are O(E*C) with no [E,N] one-hots."""
    g_edges = []
    for li, ei in enumerate(edges):
        e = np.asarray(jax.device_get(ei))
        src, dst = e[0].tolist(), e[1].tolist()
        n = int(nodes_per_level[li])
        buckets = [[] for _ in range(n)]
        for s, d in zip(src, dst):
            buckets[int(d)].append(int(s))
        dmax = max(1, max((len(b) for b in buckets), default=0))
        nbr = np.zeros((n, dmax), dtype=np.int32)
        msk = np.zeros((n, dmax), dtype=np.float32)
        for d, b in enumerate(buckets):
            nbr[d, :len(b)] = b
            msk[d, :len(b)] = 1.0
        # TODO(synk): for graphs with skewed in-degree, use sorted-edge windows + scalar
        # prefetch (PrefetchScalarGridSpec) instead of padding every node to the max degree.
        g_edges.append({'nbr': jnp.asarray(nbr), 'mask': jnp.asarray(msk), 'dmax': int(dmax)})
    g_clusters = []
    for cl in clusters:
        c = np.asarray(jax.device_get(cl)).astype(np.int32)
        nf = int(c.shape[0])
        g_clusters.append({'row': jnp.asarray(c.reshape(1, nf)),
                           'col': jnp.asarray(c.reshape(nf, 1))})
    return g_edges, g_clusters


def _pack_features(feats, c_real):
    """Lane-dense packing of several (lane-padded) feature blocks into one array.
    Wrapper-side layout plumbing only (no compute hoisted out of the kernels)."""
    packed = jnp.concatenate([f[:, :c_real] for f in feats], axis=1)
    pad = _rpad(packed.shape[1]) - packed.shape[1]
    if pad:
        packed = jnp.pad(packed, ((0, 0), (0, pad)))
    return packed


def graph_unet_resid(lp, X, g_edges, g_clusters, nodes_per_level, C):
    """One GraphUNetResid block (fixed 2-level U-Net) -- five fused pallas_calls."""
    n0, n1 = nodes_per_level
    e0, e1 = g_edges
    cl0 = g_clusters[0]
    # encoder level 0: EdgeConv + ReLU + BN, fused with avg_pool_x down to level 1
    x0, xp = pallas_edgeconv(X, e0, lp['Lconv'][0], lp['Lnorm'][0],
                             mode="pool", cluster=cl0['row'], n_out_rows=n1)
    # encoder level 1 (bottom of the U)
    x1 = pallas_edgeconv(xp, e1, lp['Lconv'][1], lp['Lnorm'][1], mode="plain")
    # decoder level 1: cat([x[1], X]) with X == x[1] -> layer-1 weights pre-summed at init,
    # fused with the X[cluster] unpool back to level 0
    xu = pallas_edgeconv(x1, e1, lp['Rconv'][1], lp['Rnorm'][1],
                         mode="unpool", cluster=cl0['col'], n_out_rows=n0)
    # decoder level 0: cat([x[0], X]) -> lane-dense packed feature; residual add fused
    xpk = _pack_features([x0, xu], C)
    xr = pallas_edgeconv(xpk, e0, lp['Rconv'][0], lp['Rnorm'][0],
                         mode="plain", residual=X)
    # X = X + mlp_out(X): fused 3-layer MLP + residual add
    return pallas_mlp(xr, lp['mlp_out'], add_input_residual=True)


def multi_tag_unet_forward(params, x, n_out, edges, clusters, nodes_per_level, num_channels):
    g_edges, g_clusters = prepare_graph(edges, clusters, nodes_per_level)
    X = pallas_mlp(x, params['enc'])                 # enc Linear (lane-padded output)
    for lp in params['layers']:
        X = graph_unet_resid(lp, X, g_edges, g_clusters, nodes_per_level, num_channels)
    Y = pallas_mlp(X, params['dec'])                 # dec Linear (lane-padded output)
    return Y[:, :n_out]                              # strip lane padding to logical n_out


# --------------------------------------------------------------------------------------------
# main
# --------------------------------------------------------------------------------------------

if __name__ == "__main__":
    # small config consistent with the module defaults (depth arg is unused in forward)
    n_in, n_out, C = 4, 4, 64
    conv_dims, mlp_dims = [64, 64], [128, 128]
    num_layers = 2            # number of GraphUNetResid blocks (each a fixed 2-level U-Net)
    N0, N1 = 16, 4            # nodes at level 0 / level 1 (clusters)

    key = jax.random.PRNGKey(0)
    kx, kp = jax.random.split(key)

    # synthetic graph data (every node has incoming edges; cluster ids consecutive)
    x = jax.random.normal(kx, (N0, n_in), jnp.float32)
    idx = jnp.arange(N0)
    edge_index0 = jnp.stack([jnp.concatenate([idx, (idx + 1) % N0, idx]),
                             jnp.concatenate([(idx + 1) % N0, idx, idx])]).astype(jnp.int32)
    s1, d1 = [], []
    for a in range(N1):
        for b in range(N1):
            if a != b:
                s1.append(a); d1.append(b)
    edge_index1 = jnp.array([s1, d1], dtype=jnp.int32)
    cluster0 = jnp.repeat(jnp.arange(N1, dtype=jnp.int32), N0 // N1)

    params = init_params(kp, n_in, n_out, C, conv_dims, mlp_dims, num_layers)

    out = multi_tag_unet_forward(params, x, n_out,
                                 edges=[edge_index0, edge_index1],
                                 clusters=[cluster0],
                                 nodes_per_level=(N0, N1),
                                 num_channels=C)
    out = jax.block_until_ready(out)
    assert out.shape == (N0, n_out) and out.dtype == jnp.float32
    assert bool(jnp.all(jnp.isfinite(out)))
    print("KERNEL_OK")
</pallas_src>

<mosaic_0001>
module attributes {stable_mosaic.version = 11 : i64} {
  func.func @_mlp_kernel(%arg0: i32, %arg1: memref<16x4xf32, #tpu.memory_space<vmem>>, %arg2: memref<4x128xbf16, #tpu.memory_space<vmem>>, %arg3: memref<1x128xf32, #tpu.memory_space<vmem>>, %arg4: memref<16x128xf32, #tpu.memory_space<vmem>>) attributes {dimension_semantics = [#tpu.dimension_semantics<parallel>], iteration_bounds = array<i64: 1>, scalar_prefetch = 0 : i64, scratch_operands = 0 : i64, tpu.core_type = #tpu.core_type<tc>, window_params = [{transform_indices = @transform_0, window_bounds = array<i64: 16, 4>}, {pipeline_mode = #tpu.pipeline_mode<synchronous>, transform_indices = @transform_1, window_bounds = array<i64: 4, 128>}, {pipeline_mode = #tpu.pipeline_mode<synchronous>, transform_indices = @transform_2, window_bounds = array<i64: 1, 128>}, {transform_indices = @transform_3, window_bounds = array<i64: 16, 128>}]} {
    %c0 = arith.constant 0 : index
    %c0_0 = arith.constant 0 : index
    %0 = vector.load %arg1[%c0, %c0_0] : memref<16x4xf32, #tpu.memory_space<vmem>>, vector<16x4xf32>
    %c0_1 = arith.constant 0 : index
    %c0_2 = arith.constant 0 : index
    %1 = vector.load %arg2[%c0_1, %c0_2] : memref<4x128xbf16, #tpu.memory_space<vmem>>, vector<4x128xbf16>
    %2 = arith.truncf %0 : vector<16x4xf32> to vector<16x4xbf16>
    %cst = arith.constant dense<0.000000e+00> : vector<16x128xf32>
    %3 = tpu.matmul %2, %1, %cst {dimension_numbers = #tpu.dot_dimension_numbers<[1], [0], [0], [1], [0, 0, 1, 1], [], []>} : vector<16x4xbf16>, vector<4x128xbf16>, vector<16x128xf32> -> vector<16x128xf32>
    %c0_3 = arith.constant 0 : index
    %c0_4 = arith.constant 0 : index
    %4 = vector.load %arg3[%c0_3, %c0_4] : memref<1x128xf32, #tpu.memory_space<vmem>>, vector<1x128xf32>
    %5 = vector.broadcast %4 : vector<1x128xf32> to vector<16x128xf32>
    %6 = arith.addf %3, %5 : vector<16x128xf32>
    %c0_5 = arith.constant 0 : index
    %c0_6 = arith.constant 0 : index
    %7 = vector.load %arg4[%c0_5, %c0_6] : memref<16x128xf32, #tpu.memory_space<vmem>>, vector<16x128xf32>
    tpu.vector_store %arg4[%c0_5, %c0_6], %6 {strides = array<i32>} : memref<16x128xf32, #tpu.memory_space<vmem>>, vector<16x128xf32>,
    return
  }
  func.func @transform_0(%arg0: i32) -> (i32, i32) {
    %c0_i32 = arith.constant 0 : i32
    %c0_i32_0 = arith.constant 0 : i32
    return %arg0, %c0_i32 : i32, i32
  }
  func.func @transform_1(%arg0: i32) -> (i32, i32) {
    %c0_i32 = arith.constant 0 : i32
    %c0_i32_0 = arith.constant 0 : i32
    %c0_i32_1 = arith.constant 0 : i32
    return %c0_i32, %c0_i32_0 : i32, i32
  }
  func.func @transform_2(%arg0: i32) -> (i32, i32) {
    %c0_i32 = arith.constant 0 : i32
    %c0_i32_0 = arith.constant 0 : i32
    %c0_i32_1 = arith.constant 0 : i32
    return %c0_i32, %c0_i32_0 : i32, i32
  }
  func.func @transform_3(%arg0: i32) -> (i32, i32) {
    %c0_i32 = arith.constant 0 : i32
    %c0_i32_0 = arith.constant 0 : i32
    return %arg0, %c0_i32 : i32, i32
  }
}

</mosaic_0001>

<bundles_post_ra>
// kernel: tpu_custom_call.1
= control target key start
LH: loop header
LB: loop body
LE: loop exit
PB: predicated region body
PF: predicated region fallthrough
CT: control target
= control target key end

     0   :  { %vm31_vm0 = vcmask 1041408   ;;  %v133_v2 = vmov 0.0   ;;  %vm134_vm1 = vmmov 0   ;;  %vm27_vm2 = vcmask 31744   ;;  %s182_s0 = inlined_call_operand.vmem [shape: f32[16,4], index: 0, kind: input, shape index: {}]   ;;  %s183_s1 = inlined_call_operand.vmem [shape: bf16[4,128], index: 1, kind: input, shape index: {}]   ;;  %s184_s2 = inlined_call_operand.vmem [shape: f32[1,128], index: 2, kind: input, shape index: {}]   ;;  %s185_s3 = inlined_call_operand.hbm [shape: f32[16,128], index: 3, kind: output, shape index: {}]  }
   0x1   :  { %v18_v0 = vld [vmem:[%s183_s1] sm:$0x3]  ;;  %98 = vmatprep.subr.bf16.mxu0 %v133_v2  ;;  %100 = vmatprep.mubr.msk.bf16.mxu0 %vm134_vm1, %v133_v2  ;;  %v17_v4 = vld [vmem:[%s182_s0 + $0x8] sm:$0xff] }
   0x2   :  { %v16_v1 = vld [vmem:[%s182_s0] sm:$0xff]  ;;  %v33_v3 = vsel %vm31_vm0, %v18_v0, 0 }
   0x3   :  { %99 = vmatpush3.bf16.msra.mxu0 %v33_v3  ;;  %v19_v5 = vpack.c.bf16 %v17_v4, %v16_v1 }
   0x4   :  { %8 = vsyncpa [#allocation3], 0  ;;  %v94_v6 = vld [vmem:[%s184_s2] ss:$0 sm:$0xff]  ;;  %s135_s19 = smov [#allocation2]  }
   0x5   :  { %s83_s20 = sshll.u32 %s135_s19, 4  ;;  %s84_s20 = int_to_ptr.vmem [resolvable:$true] %s83_s20 }
   0x6   :  { %101 = vmatmul.mubr.msk.bf16.vlgmr.msra.gmra.mrb[0].mxu0 %vm27_vm2, %v19_v5  ;;  %s109_s0 = scalar_lea.vmem %s84_s20, 256  ;;  %p114_p1 = scmp.lt.s32.totalorder %s84_s20, %s84_s20 }
   0x7   :  { %p110_p0 = scmp.ne.s32.totalorder %s84_s20, %s109_s0  ;;  %p115_p2 = scmp.lt.s32.totalorder %s109_s0, %s109_s0 }
   0x9   :  { %p116_p3 = por %p115_p2, %p114_p1 }
   0xb   :  { %p117_p4 = pnand %p116_p3, %p110_p0 }
  0xd9   :  { %v69_v7 = vpop.f32.mrb[0].mxu0 }
  0xda   :  { %v70_v8 = vadd.f32 %v94_v6, %v69_v7  ;;  %v102_v9 = vpop.f32.mrb[1].mxu0 }
  0xdb   :  { %v72_v10 = vpop.f32.mrb[2].mxu0 }
  0xdc   :  { %76 = vst [vmem:[#allocation2] sm:$0xff] %v70_v8  ;;  %v73_v11 = vadd.f32 %v94_v6, %v72_v10  ;;  %v103_v12 = vpop.f32.mrb[3].mxu0 }
  0xde   :  { %77 = vst [vmem:[#allocation2 + $0x8] sm:$0xff] %v73_v11 }
  0xdf   :  { %120 = shalt.err (!%p117_p4)
}
  0xe0   :  { %s121_s22 = scalar_lea.hbm %s185_s3, 256 }
  0xe1   :  { %p122_p5 = scmp.ne.s32.totalorder %s185_s3, %s121_s22  ;;  %p125_p6 = scmp.lt.u32.totalorder %s121_s22, %s185_s3 }
  0xe3   :  { %p127_p7 = pnand %p125_p6, %p122_p5 }
  0xe5   :  { %130 = shalt.err (!%p127_p7)
}
  0xe6   :  { %s136_s27 = smov 128   ;;  %s137_s28 = smov 8  }
  0xe7   :  { %89 = dma.vmem_to_hbm [thread:$0]  %s84_s20, 256, %s185_s3, [#allocation3], %s136_s27, %s136_s27, %s137_s28  }
  0xe8   :  { %131 = dma.done.wait [#allocation3], 256  }
  0xe9   :  { %132 = vsyncadd [#allocation3], 4294967040 }
  0xea   :  { %93 = vsyncpa [#allocation3], 1 }

</bundles_post_ra>
